<compile_context>
chip_gen: v7x
topology: tpu7x:2x2x1
jax: 0.10.0
libtpu: 0.0.40
codegen_flags: <defaults>
</compile_context>

<pallas_src>
import functools

import jax
import jax.numpy as jnp
from jax import lax
from jax.experimental import pallas as pl
from jax.experimental.pallas import tpu as pltpu


def _conv_bn_relu_kernel(x_ref, b_ref, bias_ref, o_ref, *, row_plan):
    # x_ref:    (1, H, W*Cin)           unpadded input image (NHWC, W/C flattened)
    # b_ref:    (KH, W*Cin, Wout*Cout)  per-ky block-Toeplitz weights (BN scale folded), bf16
    # bias_ref: (1, Wout*Cout)          folded BN bias, tiled over Wout
    # o_ref:    (1, Hout, Wout*Cout)    f32 output block (lane-dense last dim)
    Hout = o_ref.shape[1]
    WC_out = o_ref.shape[2]

    # Accumulate directly in the (lane-dense) f32 output block; initialize it
    # with the folded BN bias broadcast over output rows.
    o_ref[0] = jnp.broadcast_to(bias_ref[...], (Hout, WC_out))

    # Load + cast the whole image once; per-tap row windows are register slices
    # along the major (row) dim only -> no sublane shifts, no reshapes.
    xb = x_ref[0].astype(jnp.bfloat16)

    # One MXU matmul per vertical tap.  Horizontal zero-padding is implicit in
    # the Toeplitz weights; vertical zero-padding is implemented by the static
    # (ky, h0, m, r0) row plan (rows whose tap falls outside the image are
    # simply not touched for that tap).
    for ky, h0, m, r0 in row_plan:
        o_ref[0, h0:h0 + m, :] += jnp.dot(
            xb[r0:r0 + m, :], b_ref[ky], preferred_element_type=jnp.float32)

    # ReLU epilogue, dense stores.
    o_ref[...] = jnp.maximum(o_ref[...], 0.0)


def conv_bn_relu(x_nhwc, w_hwio, bn_scale, bn_bias, *, stride=1, pad=0, dilation=1):
    """Fused Conv2d(groups=1, bias=False) + BatchNorm2d(eval) + ReLU."""
    assert stride == 1, "kernel supports stride=1"  # TODO(synk): general stride
    N, H, W, Cin = x_nhwc.shape
    KH, KW, Cin_w, Cout = w_hwio.shape
    assert Cin_w == Cin

    Hout = (H + 2 * pad - dilation * (KH - 1) - 1) // stride + 1
    Wout = (W + 2 * pad - dilation * (KW - 1) - 1) // stride + 1
    WC_in, WC_out = W * Cin, Wout * Cout

    # ---- host-side weight preprocessing (tiny, amortized over N) -----------
    # Fold the BN scale into the conv weights; only the bias stays in-kernel.
    w_fold = w_hwio.astype(jnp.float32) * bn_scale.reshape(1, 1, 1, Cout).astype(jnp.float32)

    # Block-Toeplitz over the horizontal taps:
    #   B[ky, v*Cin + ci, w*Cout + co] = w_fold[ky, kx, ci, co]
    #     with v = w*stride + kx*dilation - pad, term dropped if v outside [0, W)
    # (dropping out-of-range columns implements the horizontal zero padding).
    w_in = (jnp.arange(Wout)[:, None] * stride
            + jnp.arange(KW)[None, :] * dilation - pad)                  # (Wout, KW)
    onehot = (w_in[:, :, None] == jnp.arange(W)[None, None, :]).astype(jnp.float32)
    b_toep = jnp.einsum('wkv,hkio->hviwo', onehot, w_fold)               # (KH, W, Cin, Wout, Cout)
    b_toep = b_toep.reshape(KH, WC_in, WC_out).astype(jnp.bfloat16)      # bf16 MXU operand

    # Folded BN bias tiled to one (1, Wout*Cout) row.
    bias_row = jnp.tile(bn_bias.astype(jnp.float32), Wout).reshape(1, WC_out)

    # Static per-ky row plan (implements vertical zero padding).
    row_plan = []
    for ky in range(KH):
        off = ky * dilation - pad
        h0 = max(0, -off)
        h1 = min(Hout, H - off)
        if h1 > h0:
            row_plan.append((ky, h0, h1 - h0, h0 + off))

    # Channels-last flattening is a free view of the NHWC layout (no copy).
    x_flat = x_nhwc.reshape(N, H, WC_in)

    kernel = functools.partial(_conv_bn_relu_kernel, row_plan=tuple(row_plan))

    out = pl.pallas_call(
        kernel,
        out_shape=jax.ShapeDtypeStruct((N, Hout, WC_out), jnp.float32),
        grid_spec=pltpu.PrefetchScalarGridSpec(
            num_scalar_prefetch=0,
            grid=(N,),
            in_specs=[
                pl.BlockSpec((1, H, WC_in), lambda n: (n, 0, 0)),
                pl.BlockSpec((KH, WC_in, WC_out), lambda n: (0, 0, 0)),
                pl.BlockSpec((1, WC_out), lambda n: (0, 0)),
            ],
            out_specs=pl.BlockSpec((1, Hout, WC_out), lambda n: (n, 0, 0)),
        ),
        compiler_params=pltpu.CompilerParams(
            dimension_semantics=("parallel",)),
    )(x_flat, b_toep, bias_row)

    # (N, Hout, Wout*Cout) -> (N, Hout, Wout, Cout): free layout view.
    return out.reshape(N, Hout, Wout, Cout).astype(x_nhwc.dtype)


if __name__ == "__main__":
    # ConvBnRelu(in_planes=4, out_planes=8, ksize=3, stride=1, pad=1,
    #            has_bn=True, has_relu=True, has_bias=False), eval mode.
    N, Cin, H, W = 2, 4, 16, 16
    Cout, K, PAD, DIL = 8, 3, 1, 1
    bn_eps = 1e-5

    key = jax.random.PRNGKey(0)
    k_x, k_w, k_g, k_b, k_m, k_v = jax.random.split(key, 6)

    # Input in PyTorch NCHW convention, transposed to NHWC for the kernel.
    x_nchw = jax.random.normal(k_x, (N, Cin, H, W), dtype=jnp.float32)
    x_nhwc = jnp.transpose(x_nchw, (0, 2, 3, 1))

    # Conv weight: PyTorch-style OIHW init scale, stored as HWIO.
    fan_in = Cin * K * K
    w_oihw = jax.random.uniform(k_w, (Cout, Cin, K, K), jnp.float32,
                                minval=-1.0, maxval=1.0) / jnp.sqrt(fan_in)
    w_hwio = jnp.transpose(w_oihw, (2, 3, 1, 0))

    # BatchNorm2d parameters (inference mode: running stats).
    gamma = 1.0 + 0.1 * jax.random.normal(k_g, (Cout,), jnp.float32)
    beta = 0.1 * jax.random.normal(k_b, (Cout,), jnp.float32)
    running_mean = 0.1 * jax.random.normal(k_m, (Cout,), jnp.float32)
    running_var = jnp.abs(1.0 + 0.1 * jax.random.normal(k_v, (Cout,), jnp.float32))

    bn_scale = gamma / jnp.sqrt(running_var + bn_eps)
    bn_bias = beta - running_mean * bn_scale

    out_nhwc = conv_bn_relu(x_nhwc, w_hwio, bn_scale, bn_bias,
                            stride=1, pad=PAD, dilation=DIL)
    out_nhwc = jax.block_until_ready(out_nhwc)
    out_nchw = jnp.transpose(out_nhwc, (0, 3, 1, 2))  # back to PyTorch layout
    assert out_nchw.shape == (N, Cout, H, W)

    # Reference 1 (tight): identical bf16-rounded operands, f32 accumulation.
    x_bf = x_nhwc.astype(jnp.bfloat16).astype(jnp.float32)
    w_fold_bf = (w_hwio * bn_scale[None, None, None, :]
                 ).astype(jnp.bfloat16).astype(jnp.float32)
    ref_bf = lax.conv_general_dilated(
        x_bf, w_fold_bf, window_strides=(1, 1),
        padding=((PAD, PAD), (PAD, PAD)), rhs_dilation=(DIL, DIL),
        dimension_numbers=("NHWC", "HWIO", "NHWC"),
        precision=lax.Precision.HIGHEST)
    ref_bf = jnp.maximum(ref_bf + bn_bias[None, None, None, :], 0.0)
    assert jnp.allclose(out_nhwc, ref_bf, atol=2e-3, rtol=2e-3), \
        "mismatch vs matched-precision reference"

    # Reference 2 (loose): full-f32 unfused conv -> BN -> ReLU (bf16 MXU inputs
    # in the kernel -> loosened tolerance, as noted in the perf review).
    ref_f32 = lax.conv_general_dilated(
        x_nhwc, w_hwio, window_strides=(1, 1),
        padding=((PAD, PAD), (PAD, PAD)), rhs_dilation=(DIL, DIL),
        dimension_numbers=("NHWC", "HWIO", "NHWC"),
        precision=lax.Precision.HIGHEST)
    ref_f32 = jnp.maximum(ref_f32 * bn_scale[None, None, None, :]
                          + bn_bias[None, None, None, :], 0.0)
    assert jnp.allclose(out_nhwc, ref_f32, atol=5e-2, rtol=5e-2), \
        "mismatch vs f32 reference"

    print("KERNEL_OK")
</pallas_src>

<mosaic_0001>
module attributes {stable_mosaic.version = 11 : i64} {
  func.func @_conv_bn_relu_kernel(%arg0: i32, %arg1: memref<1x16x64xf32, #tpu.memory_space<vmem>>, %arg2: memref<3x64x128xbf16, #tpu.memory_space<vmem>>, %arg3: memref<1x128xf32, #tpu.memory_space<vmem>>, %arg4: memref<1x16x128xf32, #tpu.memory_space<vmem>>) attributes {dimension_semantics = [#tpu.dimension_semantics<parallel>], iteration_bounds = array<i64: 2>, scalar_prefetch = 0 : i64, scratch_operands = 0 : i64, tpu.core_type = #tpu.core_type<tc>, window_params = [{transform_indices = @transform_0, window_bounds = array<i64: 1, 16, 64>}, {pipeline_mode = #tpu.pipeline_mode<synchronous>, transform_indices = @transform_1, window_bounds = array<i64: 3, 64, 128>}, {pipeline_mode = #tpu.pipeline_mode<synchronous>, transform_indices = @transform_2, window_bounds = array<i64: 1, 128>}, {transform_indices = @transform_3, window_bounds = array<i64: 1, 16, 128>}]} {
    %c0 = arith.constant 0 : index
    %c0_0 = arith.constant 0 : index
    %0 = vector.load %arg3[%c0, %c0_0] : memref<1x128xf32, #tpu.memory_space<vmem>>, vector<1x128xf32>
    %1 = vector.shape_cast %0 : vector<1x128xf32> to vector<1x128xf32>
    %2 = vector.broadcast %1 : vector<1x128xf32> to vector<16x128xf32>
    %c0_1 = arith.constant 0 : index
    %c0_2 = arith.constant 0 : index
    %c0_3 = arith.constant 0 : index
    %3 = vector.load %arg4[%c0_1, %c0_2, %c0_3] : memref<1x16x128xf32, #tpu.memory_space<vmem>>, vector<1x16x128xf32>
    %4 = vector.shape_cast %3 : vector<1x16x128xf32> to vector<16x128xf32>
    %5 = vector.shape_cast %2 : vector<16x128xf32> to vector<1x16x128xf32>
    tpu.vector_store %arg4[%c0_1, %c0_2, %c0_3], %5 {strides = array<i32>} : memref<1x16x128xf32, #tpu.memory_space<vmem>>, vector<1x16x128xf32>,
    %c0_4 = arith.constant 0 : index
    %c0_5 = arith.constant 0 : index
    %c0_6 = arith.constant 0 : index
    %6 = vector.load %arg1[%c0_4, %c0_5, %c0_6] : memref<1x16x64xf32, #tpu.memory_space<vmem>>, vector<1x16x64xf32>
    %7 = vector.shape_cast %6 : vector<1x16x64xf32> to vector<16x64xf32>
    %8 = arith.truncf %7 : vector<16x64xf32> to vector<16x64xbf16>
    %c0_7 = arith.constant 0 : index
    %c1 = arith.constant 1 : index
    %c0_8 = arith.constant 0 : index
    %9 = vector.load %arg4[%c0_7, %c1, %c0_8] : memref<1x16x128xf32, #tpu.memory_space<vmem>>, vector<1x15x128xf32>
    %10 = vector.shape_cast %9 : vector<1x15x128xf32> to vector<15x128xf32>
    %11 = vector.extract_strided_slice %8 {offsets = [0, 0], sizes = [15, 64], strides = [1, 1]} : vector<16x64xbf16> to vector<15x64xbf16>
    %c0_9 = arith.constant 0 : index
    %c0_10 = arith.constant 0 : index
    %c0_11 = arith.constant 0 : index
    %12 = vector.load %arg2[%c0_9, %c0_10, %c0_11] : memref<3x64x128xbf16, #tpu.memory_space<vmem>>, vector<1x64x128xbf16>
    %13 = vector.shape_cast %12 : vector<1x64x128xbf16> to vector<64x128xbf16>
    %cst = arith.constant dense<0.000000e+00> : vector<15x128xf32>
    %14 = tpu.matmul %11, %13, %cst {dimension_numbers = #tpu.dot_dimension_numbers<[1], [0], [0], [1], [0, 0, 1, 1], [], []>} : vector<15x64xbf16>, vector<64x128xbf16>, vector<15x128xf32> -> vector<15x128xf32>
    %15 = arith.addf %10, %14 : vector<15x128xf32>
    %c0_12 = arith.constant 0 : index
    %c1_13 = arith.constant 1 : index
    %c0_14 = arith.constant 0 : index
    %16 = vector.load %arg4[%c0_12, %c1_13, %c0_14] : memref<1x16x128xf32, #tpu.memory_space<vmem>>, vector<1x15x128xf32>
    %17 = vector.shape_cast %16 : vector<1x15x128xf32> to vector<15x128xf32>
    %18 = vector.shape_cast %15 : vector<15x128xf32> to vector<1x15x128xf32>
    tpu.vector_store %arg4[%c0_12, %c1_13, %c0_14], %18 {strides = array<i32>} : memref<1x16x128xf32, #tpu.memory_space<vmem>>, vector<1x15x128xf32>,
    %c0_15 = arith.constant 0 : index
    %c0_16 = arith.constant 0 : index
    %c0_17 = arith.constant 0 : index
    %19 = vector.load %arg4[%c0_15, %c0_16, %c0_17] : memref<1x16x128xf32, #tpu.memory_space<vmem>>, vector<1x16x128xf32>
    %20 = vector.shape_cast %19 : vector<1x16x128xf32> to vector<16x128xf32>
    %c1_18 = arith.constant 1 : index
    %c0_19 = arith.constant 0 : index
    %c0_20 = arith.constant 0 : index
    %21 = vector.load %arg2[%c1_18, %c0_19, %c0_20] : memref<3x64x128xbf16, #tpu.memory_space<vmem>>, vector<1x64x128xbf16>
    %22 = vector.shape_cast %21 : vector<1x64x128xbf16> to vector<64x128xbf16>
    %cst_21 = arith.constant dense<0.000000e+00> : vector<16x128xf32>
    %23 = tpu.matmul %8, %22, %cst_21 {dimension_numbers = #tpu.dot_dimension_numbers<[1], [0], [0], [1], [0, 0, 1, 1], [], []>} : vector<16x64xbf16>, vector<64x128xbf16>, vector<16x128xf32> -> vector<16x128xf32>
    %24 = arith.addf %20, %23 : vector<16x128xf32>
    %c0_22 = arith.constant 0 : index
    %c0_23 = arith.constant 0 : index
    %c0_24 = arith.constant 0 : index
    %25 = vector.load %arg4[%c0_22, %c0_23, %c0_24] : memref<1x16x128xf32, #tpu.memory_space<vmem>>, vector<1x16x128xf32>
    %26 = vector.shape_cast %25 : vector<1x16x128xf32> to vector<16x128xf32>
    %27 = vector.shape_cast %24 : vector<16x128xf32> to vector<1x16x128xf32>
    tpu.vector_store %arg4[%c0_22, %c0_23, %c0_24], %27 {strides = array<i32>} : memref<1x16x128xf32, #tpu.memory_space<vmem>>, vector<1x16x128xf32>,
    %c0_25 = arith.constant 0 : index
    %c0_26 = arith.constant 0 : index
    %c0_27 = arith.constant 0 : index
    %28 = vector.load %arg4[%c0_25, %c0_26, %c0_27] : memref<1x16x128xf32, #tpu.memory_space<vmem>>, vector<1x15x128xf32>
    %29 = vector.shape_cast %28 : vector<1x15x128xf32> to vector<15x128xf32>
    %30 = vector.extract_strided_slice %8 {offsets = [1, 0], sizes = [15, 64], strides = [1, 1]} : vector<16x64xbf16> to vector<15x64xbf16>
    %c2 = arith.constant 2 : index
    %c0_28 = arith.constant 0 : index
    %c0_29 = arith.constant 0 : index
    %31 = vector.load %arg2[%c2, %c0_28, %c0_29] : memref<3x64x128xbf16, #tpu.memory_space<vmem>>, vector<1x64x128xbf16>
    %32 = vector.shape_cast %31 : vector<1x64x128xbf16> to vector<64x128xbf16>
    %cst_30 = arith.constant dense<0.000000e+00> : vector<15x128xf32>
    %33 = tpu.matmul %30, %32, %cst_30 {dimension_numbers = #tpu.dot_dimension_numbers<[1], [0], [0], [1], [0, 0, 1, 1], [], []>} : vector<15x64xbf16>, vector<64x128xbf16>, vector<15x128xf32> -> vector<15x128xf32>
    %34 = arith.addf %29, %33 : vector<15x128xf32>
    %c0_31 = arith.constant 0 : index
    %c0_32 = arith.constant 0 : index
    %c0_33 = arith.constant 0 : index
    %35 = vector.load %arg4[%c0_31, %c0_32, %c0_33] : memref<1x16x128xf32, #tpu.memory_space<vmem>>, vector<1x15x128xf32>
    %36 = vector.shape_cast %35 : vector<1x15x128xf32> to vector<15x128xf32>
    %37 = vector.shape_cast %34 : vector<15x128xf32> to vector<1x15x128xf32>
    tpu.vector_store %arg4[%c0_31, %c0_32, %c0_33], %37 {strides = array<i32>} : memref<1x16x128xf32, #tpu.memory_space<vmem>>, vector<1x15x128xf32>,
    %c0_34 = arith.constant 0 : index
    %c0_35 = arith.constant 0 : index
    %c0_36 = arith.constant 0 : index
    %38 = vector.load %arg4[%c0_34, %c0_35, %c0_36] : memref<1x16x128xf32, #tpu.memory_space<vmem>>, vector<1x16x128xf32>
    %cst_37 = arith.constant 0.000000e+00 : f32
    %39 = vector.broadcast %cst_37 : f32 to vector<1x16x128xf32>
    %40 = arith.maximumf %38, %39 : vector<1x16x128xf32>
    %c0_38 = arith.constant 0 : index
    %c0_39 = arith.constant 0 : index
    %c0_40 = arith.constant 0 : index
    %41 = vector.load %arg4[%c0_38, %c0_39, %c0_40] : memref<1x16x128xf32, #tpu.memory_space<vmem>>, vector<1x16x128xf32>
    tpu.vector_store %arg4[%c0_38, %c0_39, %c0_40], %40 {strides = array<i32>} : memref<1x16x128xf32, #tpu.memory_space<vmem>>, vector<1x16x128xf32>,
    return
  }
  func.func @transform_0(%arg0: i32) -> (i32, i32, i32) {
    %c0_i32 = arith.constant 0 : i32
    %c0_i32_0 = arith.constant 0 : i32
    %c0_i32_1 = arith.constant 0 : i32
    return %arg0, %c0_i32, %c0_i32_0 : i32, i32, i32
  }
  func.func @transform_1(%arg0: i32) -> (i32, i32, i32) {
    %c0_i32 = arith.constant 0 : i32
    %c0_i32_0 = arith.constant 0 : i32
    %c0_i32_1 = arith.constant 0 : i32
    %c0_i32_2 = arith.constant 0 : i32
    return %c0_i32, %c0_i32_0, %c0_i32_1 : i32, i32, i32
  }
  func.func @transform_2(%arg0: i32) -> (i32, i32) {
    %c0_i32 = arith.constant 0 : i32
    %c0_i32_0 = arith.constant 0 : i32
    %c0_i32_1 = arith.constant 0 : i32
    return %c0_i32, %c0_i32_0 : i32, i32
  }
  func.func @transform_3(%arg0: i32) -> (i32, i32, i32) {
    %c0_i32 = arith.constant 0 : i32
    %c0_i32_0 = arith.constant 0 : i32
    %c0_i32_1 = arith.constant 0 : i32
    return %arg0, %c0_i32, %c0_i32_0 : i32, i32, i32
  }
}

</mosaic_0001>

<bundles_post_ra>
// kernel: tpu_custom_call.1
= control target key start
LH: loop header
LB: loop body
LE: loop exit
PB: predicated region body
PF: predicated region fallthrough
CT: control target
= control target key end

     0   :  { %8 = vsyncpa [#allocation3], 0  ;;  %s1126_s0 = inlined_call_operand.hbm [shape: f32[2,16,64], index: 0, kind: input, shape index: {}]   ;;  %s1127_s1 = inlined_call_operand.hbm [shape: bf16[3,64,128], index: 1, kind: input, shape index: {}]   ;;  %s1128_s2 = inlined_call_operand.vmem [shape: f32[1,128], index: 2, kind: input, shape index: {}]   ;;  %s1129_s3 = inlined_call_operand.hbm [shape: f32[2,16,128], index: 3, kind: output, shape index: {}]  }
   0x1   :  { %10 = vsyncpa [#allocation3 + $0x1], 0 }
   0x2   :  { %11 = vsyncpa [#allocation6], 0 }
   0x3   :  { %12 = vsyncpa [#allocation4], 0 }
   0x4   :  { %14 = vsyncpa [#allocation4 + $0x1], 0  ;;  %s895_s12 = smov 0   ;;  %s897_s13 = smov 0  }
   0x5   :  { %s899_s14 = smov 0   ;;  %s901_s15 = smov 0  }
   0x6 LB: > { %s916_s16 = sadd.s32 4294967295, %s862_s15   ;;  %s572_s17 = sadd.s32 4294967294, %s862_s15   ;;  %s862_s15 = sphi %s901_s15, %s1149_s15   ;;  %s858_s14 = sphi %s899_s14, %s1148_s14   ;;  %s854_s13 = sphi %s897_s13, %s1147_s13   ;;  %s850_s12 = sphi %s895_s12, %s1146_s12  }
   0x7   : > { %p40_p0 = scmp.ne.s32.totalorder %s854_s13, %s850_s12  ;;  %p1130_p1 = scmp.eq.s32.totalorder %s916_s16, 0 }
   0x8   : > { %p112_p3 = scmp.eq.s32.totalorder %s572_s17, 1  ;;  %p573_p5 = scmp.ge.s32.totalorder %s862_s15, 1 }
   0x9   : > { %p925_p4 = por %p1130_p1, %p40_p0  ;;  %p119_p7 = scmp.lt.s32.totalorder %s862_s15, 3 }
   0xa   : > { %p930_p6 = por %p112_p3, %p40_p0  ;;  %s864_s21 = smov [#allocation5]  }
   0xb   : > { %s1133_s18 = scalar_select %p925_p4, 1, 0 }
   0xc   : > { %s1134_s19 = scalar_select %p930_p6, 1, 0 }
   0xd   : > { %p935_p8 = pnand %p573_p5, %p119_p7  ;;  %s131_s22 = sshll.u32 %s864_s21, 4  ;;  %s939_s22 = int_to_ptr.vmem [resolvable:$true] %s131_s22 }
   0xe   : > { %s951_s24 = sadd.s32 1, %s862_s15   ;;  %s27_s25 = sadd.s32 1, %s858_s14 }
   0xf   : > { %s1135_s20 = scalar_select %p935_p8, 1, 0 }
  0x10   : > { %p665_p9 = pneg %p935_p8  ;;  %s24_s26 = ssub.s32 %s862_s15, %s951_s24 }
  0x11   : > { %s734_s29 = scalar_lea.hbm %s1127_s1, 1536 }
  0x12   : > { %p946_p11 = pnand %p665_p9, %p1130_p1  ;;  %p735_p12 = scmp.ne.s32.totalorder %s1127_s1, %s734_s29 }
  0x13   : > { %p741_p5 = scmp.lt.u32.totalorder %s734_s29, %s1127_s1 }
  0x14   : > { %p736_p13 = pneg %p946_p11 }
  0x16   : > { %p737_p0 = pnand %p736_p13, %p735_p12 }
  0x18   : > { %p738_p3 = pneg %p737_p0 }
  0x1a   : > { %p743_p7 = pnand %p741_p5, %p738_p3 }
  0x1c   : > { %746 = shalt.err (!%p743_p7)
}
  0x1d   : > { %s747_s7 = scalar_lea.vmem %s939_s22, 1536  ;;  %p755_p2 = scmp.lt.s32.totalorder %s939_s22, %s939_s22 }
  0x1e   : > { %p748_p9 = scmp.ne.s32.totalorder %s939_s22, %s747_s7  ;;  %p756_p6 = scmp.lt.s32.totalorder %s747_s7, %s747_s7 }
  0x20   : > { %p750_p10 = pnand %p748_p9, %p736_p13  ;;  %p757_p4 = por %p756_p6, %p755_p2 }
  0x22   : > { %p751_p1 = pneg %p750_p10 }
  0x24   : > { %p758_p8 = pnand %p757_p4, %p751_p1 }
  0x26   : > { %761 = shalt.err (!%p758_p8)
}
  0x27   : > { %s865_s8 = smov 64   ;;  %s866_s9 = smov 4  }
  0x28   : > { %668 = dma.hbm_to_vmem [thread:$0]  (!%p946_p11), %s1127_s1, 1536, %s939_s22, [#allocation6], %s865_s8, %s865_s8, %s866_s9  }
  0x29   : > { %p25_p2 = scmp.eq.s32.totalorder %s24_s26, 0  ;;  %p34_p1 = scmp.ne.s32.totalorder %s858_s14, %s854_s13 }
  0x2a   : > { %p35_p4 = scmp.eq.s32.totalorder %s862_s15, 0  ;;  %p678_p6 = scmp.lt.s32.totalorder %s862_s15, 2 }
  0x2b   : > { %s982_s17 = scalar_select %p25_p2, %s858_s14, %s27_s25  }
  0x2c   : > { %p36_p8 = por %p35_p4, %p34_p1  ;;  %p1137_p10 = scmp.eq.s32.totalorder %s916_s16, 1 }
  0x2d   : > { %s148_s27 = sand.u32 1, %s858_s14   ;;  %s604_s28 = sshll.u32 %s862_s15, 8 }
  0x2e   : > { %p986_p12 = por %p1137_p10, %p34_p1  ;;  %s576_s29 = sshll.u32 %s148_s27, 4 }
  0x2f   : > { %s995_s4 = scalar_lea.hbm %s1126_s0, %s604_s28  ;;  %s152_s22 = scalar_lea.vmem [#allocation2], %s576_s29 }
  0x30   : > { %s159_s25 = sshll.u32 %s152_s22, 4  ;;  %p997_p11 = pnand %p678_p6, %p36_p8  ;;  %s1001_s25 = int_to_ptr.vmem [resolvable:$true] %s159_s25 }
  0x31   : > { %s1003_s5 = scalar_lea.sflag [#allocation3], %s148_s27  ;;  %s762_s6 = scalar_lea.hbm %s995_s4, 256 }
  0x32   : > { %p763_p13 = scmp.ne.s32.totalorder %s995_s4, %s762_s6  ;;  %p764_p0 = pneg %p997_p11 }
  0x33   : > { %s767_s9 = scalar_lea.hbm %s1126_s0, 512  ;;  %p768_p7 = scmp.lt.u32.totalorder %s995_s4, %s1126_s0 }
  0x34   : > { %p765_p3 = pnand %p764_p0, %p763_p13  ;;  %p769_p9 = scmp.lt.u32.totalorder %s767_s9, %s762_s6 }
  0x35   : > { %p771_p1 = scmp.lt.u32.totalorder %s762_s6, %s995_s4 }
  0x36   : > { %p766_p5 = pneg %p765_p3  ;;  %p770_p2 = por %p769_p9, %p768_p7 }
  0x38   : > { %p772_p4 = por %p771_p1, %p770_p2 }
  0x3a   : > { %p773_p6 = pnand %p772_p4, %p766_p5 }
  0x3c   : > { %776 = shalt.err (!%p773_p6)
}
  0x3d   : > { %s777_s27 = scalar_lea.vmem %s1001_s25, 256  ;;  %s867_s28 = smov [#allocation2]  }
  0x3e   : > { %p778_p8 = scmp.ne.s32.totalorder %s1001_s25, %s777_s27  ;;  %s782_s29 = sshll.u32 %s867_s28, 4  ;;  %s783_s29 = int_to_ptr.vmem [resolvable:$false] %s782_s29 }
  0x3f   : > { %s784_s23 = scalar_lea.vmem %s783_s29, 512  ;;  %p785_p3 = scmp.lt.s32.totalorder %s1001_s25, %s783_s29 }
  0x40   : > { %p780_p10 = pnand %p778_p8, %p764_p0  ;;  %p786_p7 = scmp.lt.s32.totalorder %s784_s23, %s777_s27 }
  0x42   : > { %p781_p13 = pneg %p780_p10  ;;  %p787_p9 = por %p786_p7, %p785_p3 }
  0x44   : > { %p788_p2 = pnand %p787_p9, %p781_p13 }
  0x46   : > { %791 = shalt.err (!%p788_p2)
}
  0x47   : > { %s868_s30 = smov 128   ;;  %s869_s22 = smov 8  }
  0x48   : > { %672 = dma.hbm_to_vmem [thread:$0]  (!%p997_p11), %s995_s4, 256, %s1001_s25, %s1003_s5, %s868_s30, %s868_s30, %s869_s22  }
  0x49   : > { %p1140_p0 = scmp.ne.s32.totalorder %s1135_s20, 0 }
  0x4a   : > { %s1034_s6 = sand.u32 (!%p1140_p0), 1, %s854_s13   ;;  %p1141_p5 = scmp.ne.s32.totalorder (!%p1140_p0), %s1133_s18, 0 }
  0x4b   : > { %171 = sbr.rel (%p1140_p0) target bundleno = 365 (0x16d), region = 32  ;;  %s580_s7 = sshll.u32 (!%p1140_p0), %s1034_s6, 4 }
  0x4c   : > { %s174_s8 = scalar_lea.sflag (!%p1140_p0), [#allocation3], %s1034_s6  ;;  %s177_s9 = scalar_lea.vmem (!%p1140_p0), [#allocation2], %s580_s7 }
  0x52   : > { %837 = dma.done.wait (%p1141_p5), %s174_s8, 256  }
  0x53   : > { %839 = vsyncadd (%p1141_p5), %s174_s8, 4294967040  ;;  %p1142_p11 = scmp.eq.s32.totalorder %s916_s16, 0 }
  0x55   : > { %841 = dma.done.wait (%p1142_p11), [#allocation6], 1536   ;;  %p1143_p1 = pmov %p1142_p11 }
  0x56   : > { %v870_v0 = vmov 0.0   ;;  %vm871_vm0 = vmmov 0   ;;  %v722_v1 = vld [vmem:[#allocation5] sm:$0xff]   ;;  %v723_v2 = vld [vmem:[#allocation5 + $0x8] sm:$0xff]   ;;  %v725_v5 = vld [vmem:[#allocation5 + $0x10] sm:$0xff]   ;;  %s1055_s4 = scalar_lea.vmem [#allocation7], %s580_s7 }
  0x57   : > { %843 = vsyncadd (%p1143_p1), [#allocation6], 4294965760  ;;  %621 = vmatprep.subr.bf16.mxu0 %v870_v0  ;;  %633 = vmatprep.subr.bf16.mxu1 %v870_v0  ;;  %v724_v3 = vld [vmem:[#allocation5 + $0x20] sm:$0xff]   ;;  %v726_v4 = vld [vmem:[#allocation5 + $0x28] sm:$0xff]   ;;  %vm251_vm1 = vcmask 523264   ;;  %s605_s25 = sshll.u32 %s916_s16, 8 }
  0x58   : > { %629 = vmatprep.mubr.msk.bf16.mxu0 %vm871_vm0, %v870_v0  ;;  %641 = vmatprep.mubr.msk.bf16.mxu1 %vm871_vm0, %v870_v0  ;;  %v727_v6 = vld [vmem:[#allocation5 + $0x18] sm:$0xff]   ;;  %v728_v7 = vld [vmem:[#allocation5 + $0x30] sm:$0xff]   ;;  %v583_v11 = vld [vmem:[%s1128_s2] ss:$0 sm:$0xff]  ;;  %s489_s26 = sshll.u32 %s1055_s4, 4  ;;  %s1079_s11 = scalar_lea.hbm %s1129_s3, %s605_s25  ;;  %s1081_s26 = int_to_ptr.vmem [resolvable:$true] %s489_s26 }
  0x59   : > { %622 = vmatpush3.bf16.msra.mxu0 %v722_v1  ;;  %634 = vmatpush3.bf16.msra.mxu1 %v724_v3  ;;  %v214_v8 = vld [vmem:[%s177_s9] sm:$0xff]  ;;  %v215_v9 = vld [vmem:[%s177_s9 + $0x8] sm:$0xff]  ;;  %212 = vst [vmem:[%s1055_s4] sm:$0xff] %v583_v11  ;;  %213 = vst [vmem:[%s1055_s4 + $0x8] sm:$0xff] %v583_v11  ;;  %s476_s27 = scalar_lea.sflag [#allocation4], %s1034_s6  ;;  %s792_s28 = scalar_lea.vmem %s1081_s26, 256 }
  0x5a   : > { %623 = vmatprep.subr.bf16.mxu0 %v870_v0  ;;  %635 = vmatprep.subr.bf16.mxu1 %v870_v0  ;;  %v730_v10 = vld [vmem:[#allocation5 + $0x38] sm:$0xff]   ;;  %v216_v12 = vpack.c.bf16 %v215_v9, %v214_v8  ;;  %v729_v13 = vld [vmem:[#allocation5 + $0x40] sm:$0xff]   ;;  %v731_v14 = vld [vmem:[#allocation5 + $0x48] sm:$0xff]   ;;  %p793_p4 = scmp.ne.s32.totalorder %s1081_s26, %s792_s28  ;;  %s872_s16 = smov [#allocation7]  }
  0x5b   : > { %v732_v16 = vld [vmem:[#allocation5 + $0x50] sm:$0xff]   ;;  %v733_v19 = vld [vmem:[#allocation5 + $0x58] sm:$0xff]   ;;  %s796_s29 = sshll.u32 %s872_s16, 4  ;;  %s797_s29 = int_to_ptr.vmem [resolvable:$false] %s796_s29 }
  0x5c   : > { %v393_v15 = vshll.u32 %v216_v12, 16  ;;  %v391_v17 = vshrl.u32 %v216_v12, 16  ;;  %p794_p6 = pnand %p793_p4, %p986_p12  ;;  %s798_s23 = scalar_lea.vmem %s797_s29, 512 }
  0x5d   : > { %624 = vmatpush3.bf16.msra.mxu0 %v723_v2  ;;  %636 = vmatpush3.bf16.msra.mxu1 %v726_v4  ;;  %p799_p10 = scmp.lt.s32.totalorder %s1081_s26, %s797_s29  ;;  %p800_p13 = scmp.lt.s32.totalorder %s798_s23, %s792_s28 }
  0x5e   : > { %625 = vmatprep.subr.bf16.mxu0 %v870_v0  ;;  %637 = vmatprep.subr.bf16.mxu1 %v870_v0  ;;  %v395_v18 = vrot.slane %v393_v15, 1  ;;  %p795_p8 = pneg %p794_p6 }
  0x5f   : > { %p801_p3 = por %p800_p13, %p799_p10 }
  0x60   : > { %v396_v20 = vor.u32 %v395_v18, %v391_v17  ;;  %v217_v21 = vld [vmem:[%s1055_s4 + $0x1] sm:$0xff]  ;;  %v218_v23 = vld [vmem:[%s1055_s4 + $0x9] sm:$0x7f] }
  0x61   : > { %626 = vmatpush3.bf16.msra.mxu0 %v725_v5  ;;  %638 = vmatpush3.bf16.msra.mxu1 %v728_v7  ;;  %p802_p7 = pnand %p801_p3, %p795_p8 }
  0x62   : > { %627 = vmatprep.subr.bf16.mxu0 %v870_v0  ;;  %639 = vmatprep.subr.bf16.mxu1 %v870_v0 }
  0x65   : > { %628 = vmatpush3.bf16.msra.mxu0 %v727_v6  ;;  %640 = vmatpush3.bf16.msra.mxu1 %v730_v10 }
  0x66   : > { %645 = vmatprep.subr.bf16.mxu0 %v870_v0 }
  0x68   : > { %630 = vmatmul.mubr.msk.bf16.vlgmr.msra.gmra.mrb[0].mxu0 %vm251_vm1, %v216_v12  ;;  %642 = vmatmul.mubr.msk.bf16.vlgmr.msra.gmra.mrb[0].mxu1 %vm251_vm1, %v216_v12 }
  0x69   : > { %646 = vmatpush3.bf16.msra.mxu0 %v729_v13  ;;  %653 = vmatprep.mubr.msk.bf16.mxu0 %vm871_vm0, %v870_v0 }
  0x6a   : > { %647 = vmatprep.subr.bf16.mxu0 %v870_v0 }
  0x6d   : > { %648 = vmatpush3.bf16.msra.mxu0 %v731_v14 }
  0x6e   : > { %649 = vmatprep.subr.bf16.mxu0 %v870_v0 }
  0x71   : > { %650 = vmatpush3.bf16.msra.mxu0 %v732_v16 }
  0x72   : > { %651 = vmatprep.subr.bf16.mxu0 %v870_v0 }
  0x75   : > { %652 = vmatpush3.bf16.msra.mxu0 %v733_v19 }
  0x78   : > { %654 = vmatmul.mubr.msk.bf16.vlgmr.msra.gmra.mrb[4].mxu0 %vm251_vm1, %v396_v20 }
 0x13b   : > { %v289_v22 = vpop.f32.mrb[0].mxu0  ;;  %v369_v27 = vpop.f32.mrb[0].mxu1 }
 0x13c   : > { %v296_v24 = vadd.f32 %v289_v22, %v217_v21  ;;  %v631_v25 = vpop.f32.mrb[1].mxu0  ;;  %v643_v30 = vpop.f32.mrb[1].mxu1 }
 0x13d   : > { %v292_v26 = vpop.f32.mrb[2].mxu0  ;;  %v372_v31 = vpop.f32.mrb[2].mxu1 }
 0x13e   : > { %298 = vst [vmem:[%s1055_s4 + $0x1] sm:$0xff] %v296_v24  ;;  %v297_v28 = vadd.f32 %v292_v26, %v218_v23  ;;  %v632_v29 = vpop.f32.mrb[3].mxu0  ;;  %v644_v32 = vpop.f32.mrb[3].mxu1 }
 0x140   : > { %299 = vst [vmem:[%s1055_s4 + $0x9] sm:$0x7f] %v297_v28 }
 0x145   : > { %v300_v33 = vld [vmem:[%s1055_s4] sm:$0xff] }
 0x146   : > { %v376_v36 = vadd.f32 %v369_v27, %v300_v33 }
 0x147   : > { %v301_v34 = vld [vmem:[%s1055_s4 + $0x8] sm:$0xff] }
 0x148   : > { %v377_v35 = vadd.f32 %v372_v31, %v301_v34 }
 0x14a   : > { %379 = vst [vmem:[%s1055_s4 + $0x8] sm:$0xff] %v377_v35 }
 0x14b   : > { %v458_v37 = vpop.f32.mrb[4].mxu0 }
 0x14c   : > { %v465_v38 = vadd.f32 %v458_v37, %v376_v36  ;;  %v655_v39 = vpop.f32.mrb[5].mxu0 }
 0x14d   : > { %v461_v40 = vpop.f32.mrb[6].mxu0 }
 0x14e   : > { %v471_v41 = vmax.f32 %v465_v38, 0.0  ;;  %v656_v42 = vpop.f32.mrb[7].mxu0 }
 0x150   : > { %473 = vst [vmem:[%s1055_s4] sm:$0xff] %v471_v41 }
 0x151   : > { %v381_v43 = vld [vmem:[%s1055_s4 + $0x8] sm:$0x7f] }
 0x152   : > { %v466_v44 = vadd.f32 %v461_v40, %v381_v43 }
 0x154   : > { %468 = vst [vmem:[%s1055_s4 + $0x8] sm:$0x7f] %v466_v44 }
 0x15b   : > { %v470_v45 = vld [vmem:[%s1055_s4 + $0x8] sm:$0xff] }
 0x15c   : > { %v472_v46 = vmax.f32 %v470_v45, 0.0 }
 0x15e   : > { %474 = vst [vmem:[%s1055_s4 + $0x8] sm:$0xff] %v472_v46 }
 0x15f   : > { %805 = shalt.err (!%p802_p7)
}
 0x160   : > { %s806_s30 = scalar_lea.hbm %s1079_s11, 256  ;;  %s810_s8 = scalar_lea.hbm %s1129_s3, 512 }
 0x161   : > { %p807_p9 = scmp.ne.s32.totalorder %s1079_s11, %s806_s30  ;;  %p811_p5 = scmp.lt.u32.totalorder %s1079_s11, %s1129_s3 }
 0x162   : > { %p812_p11 = scmp.lt.u32.totalorder %s810_s8, %s806_s30  ;;  %p814_p4 = scmp.lt.u32.totalorder %s806_s30, %s1079_s11 }
 0x163   : > { %p808_p2 = pnand %p807_p9, %p986_p12 }
 0x164   : > { %p813_p1 = por %p812_p11, %p811_p5 }
 0x165   : > { %p809_p0 = pneg %p808_p2 }
 0x166   : > { %p815_p6 = por %p814_p4, %p813_p1 }
 0x168   : > { %p816_p8 = pnand %p815_p6, %p809_p0 }
 0x16a   : > { %819 = shalt.err (!%p816_p8)
}
 0x16b   : > { %s873_s20 = smov 128   ;;  %s874_s4 = smov 8  }
 0x16c   : > { %663 = dma.vmem_to_hbm [thread:$0]  (%p986_p12), %s1081_s26, 256, %s1079_s11, %s476_s27, %s873_s20, %s873_s20, %s874_s4  }
 0x16d PF: > { %s504_s25 = sand.u32 1, %s850_s12   ;;  %p1144_p10 = scmp.ne.s32.totalorder %s1134_s19, 0 }
 0x16e   : > { %p1145_p13 = scmp.ge.s32.totalorder %s862_s15, 2  ;;  %s505_s5 = scalar_lea.sflag [#allocation4], %s504_s25 }
 0x170   : > { %p674_p3 = pnand %p1145_p13, %p1144_p10 }
 0x172   : > { %845 = dma.done.wait (!%p674_p3), %s505_s5, 256  }
 0x173   : > { %847 = vsyncadd (!%p674_p3), %s505_s5, 4294967040  ;;  %p17_p7 = scmp.ge.s32.totalorder %s951_s24, 4   ;;  %s1146_s12 = smov %s854_s13 }
 0x174   : > { %s1147_s13 = smov %s858_s14  ;;  %s1148_s14 = smov %s982_s17 }
 0x175   : > { %s1149_s15 = smov %s951_s24  ;;  %19 = sbr.rel (!%p17_p7) target bundleno = 6 (0x6), region = 83 }
 0x17c   :  { %510 = vsyncpa [#allocation3], 1 }
 0x17d   :  { %512 = vsyncpa [#allocation3 + $0x1], 1 }
 0x17e   :  { %513 = vsyncpa [#allocation6], 1 }
 0x17f   :  { %514 = vsyncpa [#allocation4], 1 }
 0x180   :  { %516 = vsyncpa [#allocation4 + $0x1], 1 }

</bundles_post_ra>
